<compile_context>
chip_gen: v7x
topology: tpu7x:2x2x1
jax: 0.10.0
libtpu: 0.0.40
codegen_flags: <defaults>
</compile_context>

<pallas_src>
import jax
import jax.numpy as jnp
from jax.experimental import pallas as pl
from jax.experimental.pallas import tpu as pltpu


def _mxu_kernel(w_ref, x_ref, o_ref):
    # w_ref : VMEM (in_stacks*dim, out_stacks*dim) f32, block-diagonal softmax
    #         weights (constant index_map -> fetched once).
    # x_ref : VMEM (TB, in_stacks * dim)
    # o_ref : VMEM (TB, out_stacks * dim)
    o_ref[...] = jnp.dot(
        x_ref[...], w_ref[...], preferred_element_type=jnp.float32
    ).astype(o_ref.dtype)


def _round_up(x: int, m: int) -> int:
    return -(-x // m) * m


def _choose_tb(B: int, row_bytes: int, budget_bytes: int = 10 * 1024 * 1024) -> int:
    """Pick a sublane-aligned batch-tile size.

    Double-buffered (in+out) footprint stays around <= ~20 MiB, and for B > 8
    the tile is clamped to ceil(B/2) (rounded to 8) so the grid always has at
    least 2 steps — required for v7x megacore sharding and DMA/compute overlap.
    """
    if B <= 8:
        return B  # block equals full array extent — always legal
    tb = budget_bytes // max(row_bytes, 1)
    tb = min(tb, 8192)
    half = _round_up(-(-B // 2), 8)  # ceil(B/2), rounded up to a sublane multiple
    tb = min(tb, half)
    tb = max((tb // 8) * 8, 8)
    return tb


def stacked_hidden_selection(hidden_stack: jax.Array, weight: jax.Array) -> jax.Array:
    """hidden_stack: (*, in_stacks, dim); weight: (in_stacks, out_stacks)."""
    *lead, in_stacks, dim = hidden_stack.shape
    in_stacks_w, out_stacks = weight.shape
    assert in_stacks == in_stacks_w

    B = 1
    for s in lead:
        B *= s

    # Lane-dense 2-D view (contiguous reshape — no data movement).
    x2 = hidden_stack.reshape(B, in_stacks * dim)

    # Softmax over in_stacks, hoisted out of the kernel, then expanded to the
    # block-diagonal mixing matrix: W_big = kron(w_sm, I_dim), kept in f32.
    w_sm = jax.nn.softmax(weight.astype(jnp.float32), axis=0)  # (I, O)
    w_big = jnp.kron(w_sm, jnp.eye(dim, dtype=jnp.float32))     # (I*dim, O*dim)

    wbig_bytes = in_stacks * dim * out_stacks * dim * 4
    if wbig_bytes > 8 * 1024 * 1024:
        # TODO(synk): fall back to 3-D-block VPU mix path for very large dim.
        raise NotImplementedError("W_big too large for VMEM; large-dim path not implemented")

    itemsize = jnp.dtype(hidden_stack.dtype).itemsize
    row_bytes = (in_stacks + out_stacks) * dim * itemsize
    tb = _choose_tb(B, row_bytes)
    grid = (pl.cdiv(B, tb),)

    # Explicit scoped-VMEM budget: 2 x (in block + out block) + 2 x W_big + slack.
    block_bytes = tb * row_bytes
    needed = 2 * block_bytes + 2 * wbig_bytes + (2 << 20)
    vmem_limit = int(max(needed, 32 << 20))  # <= physical VMEM on v5e/v6e/v7x

    out2 = pl.pallas_call(
        _mxu_kernel,
        out_shape=jax.ShapeDtypeStruct((B, out_stacks * dim), hidden_stack.dtype),
        grid=grid,
        in_specs=[
            # block-diagonal weight: full extent, constant index map (fetched once)
            pl.BlockSpec((in_stacks * dim, out_stacks * dim), lambda b: (0, 0)),
            # batch-tiled, lane-dense input slab
            pl.BlockSpec((tb, in_stacks * dim), lambda b: (b, 0)),
        ],
        out_specs=pl.BlockSpec((tb, out_stacks * dim), lambda b: (b, 0)),
        compiler_params=pltpu.CompilerParams(
            dimension_semantics=("parallel",),  # >=2 steps -> both v7x TCs used
            vmem_limit_bytes=vmem_limit,
        ),
    )(w_big, x2)

    return out2.reshape(*lead, out_stacks, dim)


def _reference(hidden_stack, weight):
    w_sm = jax.nn.softmax(weight, axis=0)
    return jnp.swapaxes(jnp.swapaxes(hidden_stack, -1, -2) @ w_sm, -1, -2)


if __name__ == "__main__":
    key = jax.random.PRNGKey(0)
    k_x, k_w = jax.random.split(key)

    batch, seq = 2, 8
    in_stacks, out_stacks, dim = 4, 6, 32

    # Module init uses zeros(in_stacks, out_stacks); use deterministic random
    # values of the same shape so the kernel is exercised non-trivially.
    weight = jax.random.normal(k_w, (in_stacks, out_stacks), dtype=jnp.float32)
    hidden_stack = jax.random.normal(k_x, (batch, seq, in_stacks, dim), dtype=jnp.float32)

    out = stacked_hidden_selection(hidden_stack, weight)
    out = jax.block_until_ready(out)

    ref = _reference(hidden_stack, weight)
    assert out.shape == (batch, seq, out_stacks, dim), out.shape
    assert jnp.allclose(out, ref, atol=1e-5, rtol=1e-5), float(jnp.max(jnp.abs(out - ref)))

    print("KERNEL_OK")
</pallas_src>

<mosaic_0001>
module attributes {stable_mosaic.version = 11 : i64} {
  func.func @_mxu_kernel(%arg0: i32, %arg1: memref<128x192xf32, #tpu.memory_space<vmem>>, %arg2: memref<8x128xf32, #tpu.memory_space<vmem>>, %arg3: memref<8x192xf32, #tpu.memory_space<vmem>>) attributes {dimension_semantics = [#tpu.dimension_semantics<parallel>], iteration_bounds = array<i64: 2>, scalar_prefetch = 0 : i64, scratch_operands = 0 : i64, tpu.core_type = #tpu.core_type<tc>, window_params = [{pipeline_mode = #tpu.pipeline_mode<synchronous>, transform_indices = @transform_0, window_bounds = array<i64: 128, 192>}, {transform_indices = @transform_1, window_bounds = array<i64: 8, 128>}, {transform_indices = @transform_2, window_bounds = array<i64: 8, 192>}]} {
    %c0 = arith.constant 0 : index
    %c0_0 = arith.constant 0 : index
    %0 = vector.load %arg2[%c0, %c0_0] : memref<8x128xf32, #tpu.memory_space<vmem>>, vector<8x128xf32>
    %c0_1 = arith.constant 0 : index
    %c0_2 = arith.constant 0 : index
    %1 = vector.load %arg1[%c0_1, %c0_2] : memref<128x192xf32, #tpu.memory_space<vmem>>, vector<128x192xf32>
    %cst = arith.constant dense<0.000000e+00> : vector<8x192xf32>
    %2 = tpu.matmul %0, %1, %cst {dimension_numbers = #tpu.dot_dimension_numbers<[1], [0], [0], [1], [0, 0, 1, 1], [], []>} : vector<8x128xf32>, vector<128x192xf32>, vector<8x192xf32> -> vector<8x192xf32>
    %c0_3 = arith.constant 0 : index
    %c0_4 = arith.constant 0 : index
    %3 = vector.load %arg3[%c0_3, %c0_4] : memref<8x192xf32, #tpu.memory_space<vmem>>, vector<8x192xf32>
    tpu.vector_store %arg3[%c0_3, %c0_4], %2 {strides = array<i32>} : memref<8x192xf32, #tpu.memory_space<vmem>>, vector<8x192xf32>,
    return
  }
  func.func @transform_0(%arg0: i32) -> (i32, i32) {
    %c0_i32 = arith.constant 0 : i32
    %c0_i32_0 = arith.constant 0 : i32
    %c0_i32_1 = arith.constant 0 : i32
    return %c0_i32, %c0_i32_0 : i32, i32
  }
  func.func @transform_1(%arg0: i32) -> (i32, i32) {
    %c0_i32 = arith.constant 0 : i32
    %c0_i32_0 = arith.constant 0 : i32
    return %arg0, %c0_i32 : i32, i32
  }
  func.func @transform_2(%arg0: i32) -> (i32, i32) {
    %c0_i32 = arith.constant 0 : i32
    %c0_i32_0 = arith.constant 0 : i32
    return %arg0, %c0_i32 : i32, i32
  }
}

</mosaic_0001>

<bundles_post_ra>
// kernel: tpu_custom_call.1
= control target key start
LH: loop header
LB: loop body
LE: loop exit
PB: predicated region body
PF: predicated region fallthrough
CT: control target
= control target key end

     0   :  { %7 = vsyncpa [#allocation3], 0  ;;  %s681_s0 = inlined_call_operand.vmem [shape: f32[128,192], index: 0, kind: input, shape index: {}]   ;;  %s682_s1 = inlined_call_operand.vmem [shape: f32[16,128], index: 1, kind: input, shape index: {}]   ;;  %s683_s2 = inlined_call_operand.hbm [shape: f32[16,192], index: 2, kind: output, shape index: {}]  }
   0x1   :  { %9 = vsyncpa [#allocation3 + $0x1], 0  ;;  %s485_s9 = smov 0   ;;  %s487_s10 = smov 0  }
   0x2   :  { %s489_s11 = smov 0   ;;  %s491_s12 = smov 0  }
   0x3 LB: > { %s506_s13 = sadd.s32 4294967295, %s466_s12   ;;  %s320_s14 = sadd.s32 4294967294, %s466_s12   ;;  %s466_s12 = sphi %s491_s12, %s689_s12   ;;  %s462_s11 = sphi %s489_s11, %s688_s11   ;;  %s458_s10 = sphi %s487_s10, %s687_s10   ;;  %s454_s9 = sphi %s485_s9, %s686_s9  }
   0x4   : > { %s510_s15 = sadd.s32 1, %s466_s12   ;;  %s69_s16 = sadd.s32 1, %s462_s11 }
   0x5   : > { %s66_s17 = ssub.s32 %s466_s12, %s510_s15  ;;  %p79_p0 = scmp.ne.s32.totalorder %s462_s11, %s458_s10 }
   0x6   : > { %p67_p1 = scmp.eq.s32.totalorder %s66_s17, 0  ;;  %p80_p2 = scmp.eq.s32.totalorder %s506_s13, 1 }
   0x7   : > { %p85_p3 = scmp.ne.s32.totalorder %s458_s10, %s454_s9  ;;  %p86_p4 = scmp.eq.s32.totalorder %s320_s14, 1 }
   0x8   : > { %s521_s18 = scalar_select %p67_p1, %s462_s11, %s69_s16  }
   0x9   : > { %p523_p5 = por %p80_p2, %p79_p0  ;;  %p527_p6 = por %p86_p4, %p85_p3 }
   0xa   : > { %p323_p7 = scmp.ge.s32.totalorder %s466_s12, 1  ;;  %p114_p8 = scmp.lt.s32.totalorder %s466_s12, 3 }
   0xc   : > { %p115_p9 = pnand %p323_p7, %p114_p8 }
   0xd   : > { %v141_v0 = vld [vmem:[%s681_s0 + $0x8] sm:$0xff] (!%p115_p9)  ;;  %v143_v1 = vld [vmem:[%s681_s0 + $0x18] sm:$0xff] (!%p115_p9)  ;;  %v140_v2 = vld [vmem:[%s681_s0] sm:$0xff] (!%p115_p9)  ;;  %v468_v7 = vmov (!%p115_p9), 0.0   ;;  %p135_p10 = scmp.lt.s32.totalorder (!%p115_p9), %s506_s13, 1  ;;  %s132_s5 = sand.u32 (!%p115_p9), 1, %s458_s10  }
   0xe   : > { %118 = sbr.rel (%p115_p9) target bundleno = 275 (0x113), region = 28  ;;  %v332_v3 = vpack.c.bf16 (!%p115_p9), %v143_v1, %v141_v0  ;;  %v142_v4 = vld [vmem:[%s681_s0 + $0x10] sm:$0xff] (!%p115_p9)  ;;  %v145_v5 = vld [vmem:[%s681_s0 + $0x28] sm:$0xff] (!%p115_p9)  ;;  %v147_v6 = vld [vmem:[%s681_s0 + $0x38] sm:$0xff] (!%p115_p9)  ;;  %236 = vmatprep.mubr.f32.mxu0 (!%p115_p9), %v468_v7  ;;  %s324_s6 = sshll.u32 (!%p115_p9), %s132_s5, 4  ;;  %vm244_vm0 = vcmask (!%p115_p9), 523264  }
   0xf   : > { %v334_v8 = vpack.c.bf16 (!%p115_p9), %v142_v4, %v140_v2  ;;  %v336_v9 = vpack.c.bf16 (!%p115_p9), %v147_v6, %v145_v5  ;;  %v144_v10 = vld [vmem:[%s681_s0 + $0x20] sm:$0xff] (!%p115_p9)  ;;  %v146_v11 = vld [vmem:[%s681_s0 + $0x30] sm:$0xff] (!%p115_p9)  ;;  %v149_v12 = vld [vmem:[%s681_s0 + $0x48] sm:$0xff] (!%p115_p9)  ;;  %s134_s7 = scalar_lea.vmem (!%p115_p9), [#allocation2], %s324_s6  ;;  %s331_s14 = sshll.u32 (!%p115_p9), %s506_s13, 8 }
  0x10   : > { %333 = vmatprep.subr.bf16.mxu0 (!%p115_p9), %v332_v3  ;;  %v151_v13 = vld [vmem:[%s681_s0 + $0x58] sm:$0xff] (!%p115_p9)  ;;  %v338_v14 = vpack.c.bf16 (!%p115_p9), %v146_v11, %v144_v10  ;;  %v148_v16 = vld [vmem:[%s681_s0 + $0x40] sm:$0xff] (!%p115_p9)  ;;  %v150_v17 = vld [vmem:[%s681_s0 + $0x50] sm:$0xff] (!%p115_p9)  ;;  %s261_s8 = sshll.u32 (!%p115_p9), %s134_s7, 4  ;;  %s641_s21 = scalar_lea.hbm (!%p115_p9), %s683_s2, %s331_s14  ;;  %s636_s8 = int_to_ptr.vmem [resolvable:$true] %s261_s8 }
  0x11   : > { %335 = vmatpush1.bf16.msra.mxu0 (!%p115_p9), %v334_v8  ;;  %v340_v15 = vpack.c.bf16 (!%p115_p9), %v151_v13, %v149_v12  ;;  %v153_v18 = vld [vmem:[%s681_s0 + $0x68] sm:$0xff] (!%p115_p9)  ;;  %v155_v19 = vld [vmem:[%s681_s0 + $0x78] sm:$0xff] (!%p115_p9)  ;;  %v342_v20 = vpack.c.bf16 (!%p115_p9), %v150_v17, %v148_v16  ;;  %v152_v22 = vld [vmem:[%s681_s0 + $0x60] sm:$0xff] (!%p115_p9)  ;;  %s247_s22 = scalar_lea.sflag (!%p115_p9), [#allocation3], %s132_s5  ;;  %s404_s23 = scalar_lea.vmem (!%p115_p9), %s636_s8, 256 }
  0x12   : > { %337 = vmatprep.subr.bf16.mxu0 (!%p115_p9), %v336_v9  ;;  %v344_v21 = vpack.c.bf16 (!%p115_p9), %v155_v19, %v153_v18  ;;  %v154_v23 = vld [vmem:[%s681_s0 + $0x70] sm:$0xff] (!%p115_p9)  ;;  %v157_v24 = vld [vmem:[%s681_s0 + $0x88] sm:$0xff] (!%p115_p9)  ;;  %v159_v25 = vld [vmem:[%s681_s0 + $0x98] sm:$0xff] (!%p115_p9)  ;;  %p405_p11 = scmp.ne.s32.totalorder (!%p115_p9), %s636_s8, %s404_s23 }
  0x13   : > { %v346_v26 = vpack.c.bf16 (!%p115_p9), %v154_v23, %v152_v22  ;;  %v348_v27 = vpack.c.bf16 (!%p115_p9), %v159_v25, %v157_v24  ;;  %v156_v28 = vld [vmem:[%s681_s0 + $0x80] sm:$0xff] (!%p115_p9)  ;;  %v158_v29 = vld [vmem:[%s681_s0 + $0x90] sm:$0xff] (!%p115_p9)  ;;  %v161_v30 = vld [vmem:[%s681_s0 + $0xa8] sm:$0xff] (!%p115_p9) }
  0x14   : > { %v163_v31 = vld [vmem:[%s681_s0 + $0xb8] sm:$0xff] (!%p115_p9)  ;;  %v350_v32 = vpack.c.bf16 (!%p115_p9), %v158_v29, %v156_v28  ;;  %v160_v34 = vld [vmem:[%s681_s0 + $0xa0] sm:$0xff] (!%p115_p9)  ;;  %v162_v35 = vld [vmem:[%s681_s0 + $0xb0] sm:$0xff] (!%p115_p9)  ;;  %p406_p12 = pnand (!%p115_p9), %p405_p11, %p523_p5 }
  0x15   : > { %339 = vmatpush1.bf16.msra.mxu0 %v338_v14  ;;  %v352_v33 = vpack.c.bf16 %v163_v31, %v161_v30  ;;  %v165_v36 = vld [vmem:[%s681_s0 + $0xc8] sm:$0xff]  ;;  %v167_v37 = vld [vmem:[%s681_s0 + $0xd8] sm:$0xff]  ;;  %v354_v38 = vpack.c.bf16 %v162_v35, %v160_v34  ;;  %v164_v40 = vld [vmem:[%s681_s0 + $0xc0] sm:$0xff]  ;;  %s136_s24 = scalar_select %p135_p10, %s506_s13, 1 }
  0x16   : > { %341 = vmatprep.subr.bf16.mxu0 %v340_v15  ;;  %v356_v39 = vpack.c.bf16 %v167_v37, %v165_v36  ;;  %v166_v41 = vld [vmem:[%s681_s0 + $0xd0] sm:$0xff]  ;;  %v169_v42 = vld [vmem:[%s681_s0 + $0xe8] sm:$0xff]  ;;  %v171_v43 = vld [vmem:[%s681_s0 + $0xf8] sm:$0xff]  ;;  %p407_p13 = pneg %p406_p12  ;;  %s469_s13 = smov [#allocation2]  }
  0x17   : > { %v358_v44 = vpack.c.bf16 %v166_v41, %v164_v40  ;;  %v360_v45 = vpack.c.bf16 %v171_v43, %v169_v42  ;;  %v168_v46 = vld [vmem:[%s681_s0 + $0xe0] sm:$0xff]  ;;  %v170_v47 = vld [vmem:[%s681_s0 + $0xf0] sm:$0xff]  ;;  %s325_s29 = sshll.u32 %s136_s24, 3  ;;  %s408_s24 = sshll.u32 %s469_s13, 4  ;;  %s409_s24 = int_to_ptr.vmem [resolvable:$false] %s408_s24 }
  0x18   : > { %v362_v48 = vpack.c.bf16 %v170_v47, %v168_v46  ;;  %s138_s4 = scalar_lea.vmem %s682_s1, %s325_s29  ;;  %s410_s25 = scalar_lea.vmem %s409_s24, 512 }
  0x19   : > { %343 = vmatpush1.bf16.msra.mxu0 %v342_v20  ;;  %v139_v49 = vld [vmem:[%s138_s4] sm:$0xff]  ;;  %p411_p0 = scmp.lt.s32.totalorder %s636_s8, %s409_s24  ;;  %p412_p1 = scmp.lt.s32.totalorder %s410_s25, %s404_s23 }
  0x1a   : > { %345 = vmatprep.subr.bf16.mxu0 %v344_v21 }
  0x1b   : > { %p413_p2 = por %p412_p1, %p411_p0 }
  0x1d   : > { %347 = vmatpush1.bf16.msra.mxu0 %v346_v26  ;;  %p414_p3 = pnand %p413_p2, %p407_p13 }
  0x1e   : > { %349 = vmatprep.subr.bf16.mxu0 %v348_v27 }
  0x21   : > { %351 = vmatpush1.bf16.msra.mxu0 %v350_v32 }
  0x22   : > { %353 = vmatprep.subr.bf16.mxu0 %v352_v33 }
  0x25   : > { %355 = vmatpush1.bf16.msra.mxu0 %v354_v38 }
  0x26   : > { %357 = vmatprep.subr.bf16.mxu0 %v356_v39 }
  0x29   : > { %359 = vmatpush1.bf16.msra.mxu0 %v358_v44 }
  0x2a   : > { %361 = vmatprep.subr.bf16.mxu0 %v360_v45 }
  0x2d   : > { %363 = vmatpush1.bf16.msra.mxu0 %v362_v48 }
  0x30   : > { %237 = vmatmul.mubr.f32.vlgmr.msra.gmra.mrb[0].mxu0 %v139_v49 }
 0x103   : > { %v238_v50 = vpop.f32.mrb[0].mxu0 }
 0x104   : > { %243 = vst [vmem:[%s134_s7] sm:$0xff] %v238_v50  ;;  %v240_v51 = vpop.f32.mrb[1].mxu0 }
 0x105   : > { %245 = vst.msk [vmem:[%s134_s7 + $0x8] sm:$0xff] %vm244_vm0, %v240_v51 }
 0x106   : > { %417 = shalt.err (!%p414_p3)
}
 0x107   : > { %s418_s26 = scalar_lea.hbm %s641_s21, 256  ;;  %s422_s29 = scalar_lea.hbm %s683_s2, 512 }
 0x108   : > { %p419_p4 = scmp.ne.s32.totalorder %s641_s21, %s418_s26  ;;  %p423_p9 = scmp.lt.u32.totalorder %s641_s21, %s683_s2 }
 0x109   : > { %p424_p10 = scmp.lt.u32.totalorder %s422_s29, %s418_s26  ;;  %p426_p12 = scmp.lt.u32.totalorder %s418_s26, %s641_s21 }
 0x10a   : > { %p420_p7 = pnand %p419_p4, %p523_p5 }
 0x10b   : > { %p425_p11 = por %p424_p10, %p423_p9 }
 0x10c   : > { %p421_p8 = pneg %p420_p7 }
 0x10d   : > { %p427_p13 = por %p426_p12, %p425_p11 }
 0x10f   : > { %p428_p0 = pnand %p427_p13, %p421_p8 }
 0x111   : > { %431 = shalt.err (!%p428_p0)
}
 0x112   : > { %364 = dma.vmem_to_hbm [thread:$0]  (%p523_p5), %s636_s8, 256, %s641_s21, %s247_s22  }
 0x113 PF: > { %p370_p1 = scmp.ge.s32.totalorder %s466_s12, 2  ;;  %s273_s4 = sand.u32 1, %s454_s9  }
 0x114   : > { %s274_s5 = scalar_lea.sflag [#allocation3], %s273_s4 }
 0x115   : > { %p367_p2 = pnand %p370_p1, %p527_p6 }
 0x117   : > { %449 = dma.done.wait (!%p367_p2), %s274_s5, 256  }
 0x118   : > { %451 = vsyncadd (!%p367_p2), %s274_s5, 4294967040  ;;  %p12_p3 = scmp.ge.s32.totalorder %s510_s15, 4   ;;  %s686_s9 = smov %s458_s10 }
 0x119   : > { %s687_s10 = smov %s462_s11  ;;  %s688_s11 = smov %s521_s18 }
 0x11a   : > { %s689_s12 = smov %s510_s15  ;;  %14 = sbr.rel (!%p12_p3) target bundleno = 3 (0x3), region = 63 }
 0x121   :  { %279 = vsyncpa [#allocation3], 1 }
 0x122   :  { %281 = vsyncpa [#allocation3 + $0x1], 1 }

</bundles_post_ra>
